<compile_context>
chip_gen: v6e
topology: v6e:2x2x1
jax: 0.10.0
libtpu: 0.0.40
codegen_flags: <defaults>
</compile_context>

<pallas_src>
import functools

import jax
import jax.numpy as jnp
from jax.experimental import pallas as pl
from jax.experimental.pallas import tpu as pltpu

EPS = 1e-5


# ------------------------------------------------------------------ kernel ---
def _up_doubleconv_kernel(x_ref, m_ref, w1_ref, w2_ref, alpha_ref, o_ref, *, H, W):
    # x_ref    : (1, Cin_p, H*W) bf16   concat input, channel-on-sublane / spatial-on-lane
    # m_ref    : (8, H*W)        f32    border masks for the 8 non-center taps
    # w1_ref   : (Cmid_p, 9*Cin_p) bf16 conv1 weights (tap-major, channel-minor cols)
    # w2_ref   : (Cout, 9*Cmid_p)  bf16 conv2 weights (same column order)
    # alpha_ref: (2,) SMEM f32          PReLU slopes (layer1, layer2)
    # o_ref    : (1, Cout, H*W)  f32    lane-dense output (== flattened NCHW)
    HW = H * W
    masks = m_ref[...]                                       # (8, HW) f32, loaded once

    def stack_taps(z):
        """z: (C, HW) f32 -> (9*C, HW) f32, taps stacked tap-major on sublanes."""
        taps = []
        mi = 0
        for ky in range(3):
            for kx in range(3):
                oy, ox = ky - 1, kx - 1
                if oy == 0 and ox == 0:
                    taps.append(z)                           # center tap: no mask needed
                else:
                    s = oy * W + ox                          # flat spatial offset (static)
                    shifted = pltpu.roll(z, shift=(-s) % HW, axis=1)
                    taps.append(shifted * masks[mi:mi + 1])  # one multiply per tap
                    mi += 1
        return jnp.concatenate(taps, axis=0)

    def inorm_prelu(acc, a):
        # InstanceNorm2d (biased var, eps inside sqrt, no affine) + PReLU, all f32.
        m = jnp.mean(acc, axis=1, keepdims=True)
        c = acc - m
        v = jnp.mean(c * c, axis=1, keepdims=True)
        y = c * jax.lax.rsqrt(v + EPS)
        return jnp.where(y >= 0, y, a * y)

    # ---- Conv1: single (Cmid_p, 9*Cin_p) @ (9*Cin_p, HW) bf16 MXU matmul ----
    x = x_ref[0].astype(jnp.float32)                         # (Cin_p, HW) f32 for VPU work
    t1 = stack_taps(x).astype(jnp.bfloat16)                  # exact: values are bf16-valued
    acc1 = jnp.dot(w1_ref[...], t1, preferred_element_type=jnp.float32)
    y1 = inorm_prelu(acc1, alpha_ref[0])                     # (Cmid_p, HW) f32

    # ---- Conv2: single (Cout, 9*Cmid_p) @ (9*Cmid_p, HW) bf16 MXU matmul ----
    t2 = stack_taps(y1).astype(jnp.bfloat16)
    acc2 = jnp.dot(w2_ref[...], t2, preferred_element_type=jnp.float32)
    y2 = inorm_prelu(acc2, alpha_ref[1])                     # (Cout, HW) f32

    o_ref[0] = y2.astype(o_ref.dtype)                        # lane-dense store


# --------------------------------------------------------------- host glue ---
def _round_up(x, m):
    return (x + m - 1) // m * m


def _interp_matrix(n_in, n_out):
    """(n_out, n_in) align_corners=True linear-interpolation matrix (gather-free)."""
    if n_out == 1:
        pos = jnp.zeros((1,), jnp.float32)
    else:
        pos = jnp.arange(n_out, dtype=jnp.float32) * (n_in - 1) / (n_out - 1)
    lo = jnp.clip(jnp.floor(pos).astype(jnp.int32), 0, n_in - 1)
    hi = jnp.minimum(lo + 1, n_in - 1)
    t = pos - lo.astype(jnp.float32)
    return (jax.nn.one_hot(lo, n_in, dtype=jnp.float32) * (1.0 - t)[:, None]
            + jax.nn.one_hot(hi, n_in, dtype=jnp.float32) * t[:, None])


def bilinear_upsample_x2_align_corners(x):
    """NCHW bilinear upsample x2 (align_corners=True) as two dense matmuls."""
    N, C, H, W = x.shape
    Ay = _interp_matrix(H, 2 * H)                            # (2H, H)
    Ax = _interp_matrix(W, 2 * W)                            # (2W, W)
    return jnp.einsum("ph,nchw,qw->ncpq", Ay, x, Ax)


def _border_masks(H, W):
    """(8, H*W) f32 multiplicative masks for the 8 non-center 3x3 taps."""
    hh = jnp.arange(H, dtype=jnp.int32)[:, None]
    ww = jnp.arange(W, dtype=jnp.int32)[None, :]
    rows = []
    for ky in range(3):
        for kx in range(3):
            if ky == 1 and kx == 1:
                continue
            oy, ox = ky - 1, kx - 1
            valid = ((hh + oy >= 0) & (hh + oy < H)
                     & (ww + ox >= 0) & (ww + ox < W))
            rows.append(valid.reshape(-1))
    return jnp.stack(rows).astype(jnp.float32)               # (8, HW)


def up_forward_pallas(x1, x2, w1_oihw, a1, w2_oihw, a2):
    """Full `Up.forward`.  x1, x2 are NCHW float32; weights are OIHW (no bias)."""
    # upsample + pad + concat (glue, plain JAX — no gathers, no im2col)
    x1u = bilinear_upsample_x2_align_corners(x1)
    diffY = x2.shape[2] - x1u.shape[2]
    diffX = x2.shape[3] - x1u.shape[3]
    x1u = jnp.pad(x1u, ((0, 0), (0, 0),
                        (diffY // 2, diffY - diffY // 2),
                        (diffX // 2, diffX - diffX // 2)))
    x = jnp.concatenate([x2, x1u], axis=1)                   # NCHW, C = in_channels

    N, Cin, H, W = x.shape
    Cmid = w1_oihw.shape[0]
    Cout = w2_oihw.shape[0]
    HW = H * W
    Cin_p = _round_up(Cin, 8)
    Cmid_p = _round_up(Cmid, 8)

    # activation: (N, Cin_p, HW) bf16, channel padded so sublane concat is clean
    x_p = jnp.pad(x, ((0, 0), (0, Cin_p - Cin), (0, 0), (0, 0)))
    x_flat = x_p.reshape(N, Cin_p, HW).astype(jnp.bfloat16)

    # conv1 weights -> (Cmid_p, 9*Cin_p), columns ordered (tap, cin); bf16
    w1_p = jnp.pad(w1_oihw, ((0, Cmid_p - Cmid), (0, Cin_p - Cin), (0, 0), (0, 0)))
    w1_2d = jnp.transpose(w1_p, (0, 2, 3, 1)).reshape(Cmid_p, 9 * Cin_p)
    w1_2d = w1_2d.astype(jnp.bfloat16)
    # conv2 weights -> (Cout, 9*Cmid_p), same column order; bf16
    w2_p = jnp.pad(w2_oihw, ((0, 0), (0, Cmid_p - Cmid), (0, 0), (0, 0)))
    w2_2d = jnp.transpose(w2_p, (0, 2, 3, 1)).reshape(Cout, 9 * Cmid_p)
    w2_2d = w2_2d.astype(jnp.bfloat16)

    masks = _border_masks(H, W)                              # (8, HW) f32
    alphas = jnp.stack([jnp.asarray(a1, jnp.float32).reshape(()),
                        jnp.asarray(a2, jnp.float32).reshape(())])  # (2,) SMEM scalars

    kernel = functools.partial(_up_doubleconv_kernel, H=H, W=W)

    flops = 2 * N * HW * (Cmid_p * 9 * Cin_p + Cout * 9 * Cmid_p)
    bytes_accessed = (x_flat.size * 2 + masks.size * 4 + w1_2d.size * 2
                      + w2_2d.size * 2 + N * Cout * HW * 4)
    cost = pl.CostEstimate(flops=flops,
                           transcendentals=N * (Cmid_p + Cout),
                           bytes_accessed=bytes_accessed)

    out_flat = pl.pallas_call(
        kernel,
        out_shape=jax.ShapeDtypeStruct((N, Cout, HW), jnp.float32),
        grid_spec=pltpu.PrefetchScalarGridSpec(
            num_scalar_prefetch=0,
            grid=(N,),
            in_specs=[
                pl.BlockSpec((1, Cin_p, HW), lambda n: (n, 0, 0)),
                pl.BlockSpec((8, HW), lambda n: (0, 0)),
                pl.BlockSpec((Cmid_p, 9 * Cin_p), lambda n: (0, 0)),
                pl.BlockSpec((Cout, 9 * Cmid_p), lambda n: (0, 0)),
                pl.BlockSpec(memory_space=pltpu.MemorySpace.SMEM),
            ],
            out_specs=pl.BlockSpec((1, Cout, HW), lambda n: (n, 0, 0)),
        ),
        compiler_params=pltpu.CompilerParams(
            dimension_semantics=("parallel",),
            vmem_limit_bytes=32 * 1024 * 1024),
        cost_estimate=cost,
    )(x_flat, masks, w1_2d, w2_2d, alphas)

    # (N, Cout, H*W) is already flattened NCHW -> just reshape, no transpose
    return out_flat.reshape(N, Cout, H, W)


# --------------------------------------------------------- plain-JAX check ---
def up_forward_ref(x1, x2, w1_oihw, a1, w2_oihw, a2, mxu_dtype=jnp.bfloat16):
    """Reference with XLA convs.  Conv operands are cast to `mxu_dtype` (f32
    accumulation) to mirror the kernel's bf16 MXU-operand precision."""
    x1u = bilinear_upsample_x2_align_corners(x1)
    diffY = x2.shape[2] - x1u.shape[2]
    diffX = x2.shape[3] - x1u.shape[3]
    x1u = jnp.pad(x1u, ((0, 0), (0, 0),
                        (diffY // 2, diffY - diffY // 2),
                        (diffX // 2, diffX - diffX // 2)))
    x = jnp.concatenate([x2, x1u], axis=1)

    def conv(z, w):
        return jax.lax.conv_general_dilated(
            z.astype(mxu_dtype), w.astype(mxu_dtype), (1, 1), ((1, 1), (1, 1)),
            dimension_numbers=("NCHW", "OIHW", "NCHW"),
            preferred_element_type=jnp.float32)

    def inorm(z):
        m = z.mean(axis=(2, 3), keepdims=True)
        v = ((z - m) ** 2).mean(axis=(2, 3), keepdims=True)
        return (z - m) * jax.lax.rsqrt(v + EPS)

    def prelu(z, a):
        return jnp.where(z >= 0, z, a * z)

    y = prelu(inorm(conv(x, w1_oihw)), a1)
    y = prelu(inorm(conv(y, w2_oihw)), a2)
    return y


# --------------------------------------------------------------------- main --
if __name__ == "__main__":
    # Up(in_channels=8, out_channels=4, bilinear=True, bn=True)
    in_channels, out_channels = 8, 4
    mid_channels = in_channels // 2                          # DoubleConv mid = 4
    N = 2

    key = jax.random.PRNGKey(0)
    k1, k2, k3, k4 = jax.random.split(key, 4)

    # x1: deep feature (in_channels//2 channels, half spatial), x2: skip feature
    x1 = jax.random.normal(k1, (N, in_channels // 2, 8, 8), jnp.float32)
    x2 = jax.random.normal(k2, (N, in_channels // 2, 16, 16), jnp.float32)

    # PyTorch-layout params (OIHW, no bias; PReLU slope 0.25)
    w1 = 0.1 * jax.random.normal(k3, (mid_channels, in_channels, 3, 3), jnp.float32)
    w2 = 0.1 * jax.random.normal(k4, (out_channels, mid_channels, 3, 3), jnp.float32)
    a1 = jnp.float32(0.25)
    a2 = jnp.float32(0.25)

    out = jax.block_until_ready(jax.jit(up_forward_pallas)(x1, x2, w1, a1, w2, a2))
    ref = jax.block_until_ready(up_forward_ref(x1, x2, w1, a1, w2, a2))

    assert out.shape == (N, out_channels, 16, 16), out.shape
    max_err = float(jnp.max(jnp.abs(out - ref)))
    # tolerance covers bf16-MXU-operand rounding (accumulation / norm are f32)
    assert max_err < 1e-2, max_err
    print("KERNEL_OK")
</pallas_src>

<mosaic_0001>
module attributes {stable_mosaic.version = 11 : i64} {
  func.func @_up_doubleconv_kernel(%arg0: i32, %arg1: memref<1x8x256xbf16, #tpu.memory_space<vmem>>, %arg2: memref<8x256xf32, #tpu.memory_space<vmem>>, %arg3: memref<8x72xbf16, #tpu.memory_space<vmem>>, %arg4: memref<4x72xbf16, #tpu.memory_space<vmem>>, %arg5: memref<2xf32, #tpu.memory_space<smem>>, %arg6: memref<1x4x256xf32, #tpu.memory_space<vmem>>) attributes {dimension_semantics = [#tpu.dimension_semantics<parallel>], iteration_bounds = array<i64: 2>, scalar_prefetch = 0 : i64, scratch_operands = 0 : i64, tpu.core_type = #tpu.core_type<tc>, window_params = [{transform_indices = @transform_0, window_bounds = array<i64: 1, 8, 256>}, {pipeline_mode = #tpu.pipeline_mode<synchronous>, transform_indices = @transform_1, window_bounds = array<i64: 8, 256>}, {pipeline_mode = #tpu.pipeline_mode<synchronous>, transform_indices = @transform_2, window_bounds = array<i64: 8, 72>}, {pipeline_mode = #tpu.pipeline_mode<synchronous>, transform_indices = @transform_3, window_bounds = array<i64: 4, 72>}, {transform_indices = @transform_4, window_bounds = array<i64: 2>}, {transform_indices = @transform_5, window_bounds = array<i64: 1, 4, 256>}]} {
    %c0 = arith.constant 0 : index
    %c0_0 = arith.constant 0 : index
    %0 = vector.load %arg2[%c0, %c0_0] : memref<8x256xf32, #tpu.memory_space<vmem>>, vector<8x256xf32>
    %c0_1 = arith.constant 0 : index
    %c0_2 = arith.constant 0 : index
    %c0_3 = arith.constant 0 : index
    %1 = vector.load %arg1[%c0_1, %c0_2, %c0_3] : memref<1x8x256xbf16, #tpu.memory_space<vmem>>, vector<1x8x256xbf16>
    %2 = vector.shape_cast %1 : vector<1x8x256xbf16> to vector<8x256xbf16>
    %3 = arith.extf %2 : vector<8x256xbf16> to vector<8x256xf32>
    %c17_i32 = arith.constant 17 : i32
    %4 = tpu.dynamic_rotate %3 by %c17_i32 dim 1 : vector<8x256xf32>, i32 -> vector<8x256xf32>
    %5 = vector.extract_strided_slice %0 {offsets = [0, 0], sizes = [1, 256], strides = [1, 1]} : vector<8x256xf32> to vector<1x256xf32>
    %6 = vector.broadcast %5 : vector<1x256xf32> to vector<8x256xf32>
    %7 = arith.mulf %4, %6 : vector<8x256xf32>
    %c16_i32 = arith.constant 16 : i32
    %8 = tpu.dynamic_rotate %3 by %c16_i32 dim 1 : vector<8x256xf32>, i32 -> vector<8x256xf32>
    %9 = vector.extract_strided_slice %0 {offsets = [1, 0], sizes = [1, 256], strides = [1, 1]} : vector<8x256xf32> to vector<1x256xf32>
    %10 = vector.broadcast %9 : vector<1x256xf32> to vector<8x256xf32>
    %11 = arith.mulf %8, %10 : vector<8x256xf32>
    %c15_i32 = arith.constant 15 : i32
    %12 = tpu.dynamic_rotate %3 by %c15_i32 dim 1 : vector<8x256xf32>, i32 -> vector<8x256xf32>
    %13 = vector.extract_strided_slice %0 {offsets = [2, 0], sizes = [1, 256], strides = [1, 1]} : vector<8x256xf32> to vector<1x256xf32>
    %14 = vector.broadcast %13 : vector<1x256xf32> to vector<8x256xf32>
    %15 = arith.mulf %12, %14 : vector<8x256xf32>
    %c1_i32 = arith.constant 1 : i32
    %16 = tpu.dynamic_rotate %3 by %c1_i32 dim 1 : vector<8x256xf32>, i32 -> vector<8x256xf32>
    %17 = vector.extract_strided_slice %0 {offsets = [3, 0], sizes = [1, 256], strides = [1, 1]} : vector<8x256xf32> to vector<1x256xf32>
    %18 = vector.broadcast %17 : vector<1x256xf32> to vector<8x256xf32>
    %19 = arith.mulf %16, %18 : vector<8x256xf32>
    %c255_i32 = arith.constant 255 : i32
    %20 = tpu.dynamic_rotate %3 by %c255_i32 dim 1 : vector<8x256xf32>, i32 -> vector<8x256xf32>
    %21 = vector.extract_strided_slice %0 {offsets = [4, 0], sizes = [1, 256], strides = [1, 1]} : vector<8x256xf32> to vector<1x256xf32>
    %22 = vector.broadcast %21 : vector<1x256xf32> to vector<8x256xf32>
    %23 = arith.mulf %20, %22 : vector<8x256xf32>
    %c241_i32 = arith.constant 241 : i32
    %24 = tpu.dynamic_rotate %3 by %c241_i32 dim 1 : vector<8x256xf32>, i32 -> vector<8x256xf32>
    %25 = vector.extract_strided_slice %0 {offsets = [5, 0], sizes = [1, 256], strides = [1, 1]} : vector<8x256xf32> to vector<1x256xf32>
    %26 = vector.broadcast %25 : vector<1x256xf32> to vector<8x256xf32>
    %27 = arith.mulf %24, %26 : vector<8x256xf32>
    %c240_i32 = arith.constant 240 : i32
    %28 = tpu.dynamic_rotate %3 by %c240_i32 dim 1 : vector<8x256xf32>, i32 -> vector<8x256xf32>
    %29 = vector.extract_strided_slice %0 {offsets = [6, 0], sizes = [1, 256], strides = [1, 1]} : vector<8x256xf32> to vector<1x256xf32>
    %30 = vector.broadcast %29 : vector<1x256xf32> to vector<8x256xf32>
    %31 = arith.mulf %28, %30 : vector<8x256xf32>
    %c239_i32 = arith.constant 239 : i32
    %32 = tpu.dynamic_rotate %3 by %c239_i32 dim 1 : vector<8x256xf32>, i32 -> vector<8x256xf32>
    %33 = vector.extract_strided_slice %0 {offsets = [7, 0], sizes = [1, 256], strides = [1, 1]} : vector<8x256xf32> to vector<1x256xf32>
    %34 = vector.broadcast %33 : vector<1x256xf32> to vector<8x256xf32>
    %35 = arith.mulf %32, %34 : vector<8x256xf32>
    %36 = tpu.concatenate %7, %11, %15, %19, %3, %23, %27, %31, %35 in 0 : vector<8x256xf32>, vector<8x256xf32>, vector<8x256xf32>, vector<8x256xf32>, vector<8x256xf32>, vector<8x256xf32>, vector<8x256xf32>, vector<8x256xf32>, vector<8x256xf32> -> vector<72x256xf32>
    %37 = arith.truncf %36 : vector<72x256xf32> to vector<72x256xbf16>
    %c0_4 = arith.constant 0 : index
    %c0_5 = arith.constant 0 : index
    %38 = vector.load %arg3[%c0_4, %c0_5] : memref<8x72xbf16, #tpu.memory_space<vmem>>, vector<8x72xbf16>
    %cst = arith.constant dense<0.000000e+00> : vector<8x256xf32>
    %39 = tpu.matmul %38, %37, %cst {dimension_numbers = #tpu.dot_dimension_numbers<[1], [0], [0], [1], [0, 0, 1, 1], [], []>} : vector<8x72xbf16>, vector<72x256xbf16>, vector<8x256xf32> -> vector<8x256xf32>
    %c0_6 = arith.constant 0 : index
    %40 = memref.load %arg5[%c0_6] : memref<2xf32, #tpu.memory_space<smem>>
    %cst_7 = arith.constant dense<0.000000e+00> : vector<8xf32>
    %41 = vector.multi_reduction <add>, %39, %cst_7 [1] : vector<8x256xf32> to vector<8xf32>
    %42 = vector.shape_cast %41 : vector<8xf32> to vector<8x1xf32>
    %cst_8 = arith.constant 2.560000e+02 : f32
    %43 = vector.broadcast %cst_8 : f32 to vector<8x1xf32>
    %44 = arith.divf %42, %43 : vector<8x1xf32>
    %45 = vector.broadcast %44 : vector<8x1xf32> to vector<8x256xf32>
    %46 = arith.subf %39, %45 : vector<8x256xf32>
    %47 = arith.mulf %46, %46 : vector<8x256xf32>
    %cst_9 = arith.constant dense<0.000000e+00> : vector<8xf32>
    %48 = vector.multi_reduction <add>, %47, %cst_9 [1] : vector<8x256xf32> to vector<8xf32>
    %49 = vector.shape_cast %48 : vector<8xf32> to vector<8x1xf32>
    %cst_10 = arith.constant 2.560000e+02 : f32
    %50 = vector.broadcast %cst_10 : f32 to vector<8x1xf32>
    %51 = arith.divf %49, %50 : vector<8x1xf32>
    %cst_11 = arith.constant 9.99999974E-6 : f32
    %52 = vector.broadcast %cst_11 : f32 to vector<8x1xf32>
    %53 = arith.addf %51, %52 : vector<8x1xf32>
    %54 = math.rsqrt %53 : vector<8x1xf32>
    %55 = vector.broadcast %54 : vector<8x1xf32> to vector<8x256xf32>
    %56 = arith.mulf %46, %55 : vector<8x256xf32>
    %cst_12 = arith.constant 0.000000e+00 : f32
    %57 = vector.broadcast %cst_12 : f32 to vector<8x256xf32>
    %58 = arith.cmpf oge, %56, %57 : vector<8x256xf32>
    %59 = vector.broadcast %40 : f32 to vector<8x256xf32>
    %60 = arith.mulf %59, %56 : vector<8x256xf32>
    %61 = arith.select %58, %56, %60 : vector<8x256xi1>, vector<8x256xf32>
    %c17_i32_13 = arith.constant 17 : i32
    %62 = tpu.dynamic_rotate %61 by %c17_i32_13 dim 1 : vector<8x256xf32>, i32 -> vector<8x256xf32>
    %63 = vector.extract_strided_slice %0 {offsets = [0, 0], sizes = [1, 256], strides = [1, 1]} : vector<8x256xf32> to vector<1x256xf32>
    %64 = vector.broadcast %63 : vector<1x256xf32> to vector<8x256xf32>
    %65 = arith.mulf %62, %64 : vector<8x256xf32>
    %c16_i32_14 = arith.constant 16 : i32
    %66 = tpu.dynamic_rotate %61 by %c16_i32_14 dim 1 : vector<8x256xf32>, i32 -> vector<8x256xf32>
    %67 = vector.extract_strided_slice %0 {offsets = [1, 0], sizes = [1, 256], strides = [1, 1]} : vector<8x256xf32> to vector<1x256xf32>
    %68 = vector.broadcast %67 : vector<1x256xf32> to vector<8x256xf32>
    %69 = arith.mulf %66, %68 : vector<8x256xf32>
    %c15_i32_15 = arith.constant 15 : i32
    %70 = tpu.dynamic_rotate %61 by %c15_i32_15 dim 1 : vector<8x256xf32>, i32 -> vector<8x256xf32>
    %71 = vector.extract_strided_slice %0 {offsets = [2, 0], sizes = [1, 256], strides = [1, 1]} : vector<8x256xf32> to vector<1x256xf32>
    %72 = vector.broadcast %71 : vector<1x256xf32> to vector<8x256xf32>
    %73 = arith.mulf %70, %72 : vector<8x256xf32>
    %c1_i32_16 = arith.constant 1 : i32
    %74 = tpu.dynamic_rotate %61 by %c1_i32_16 dim 1 : vector<8x256xf32>, i32 -> vector<8x256xf32>
    %75 = vector.extract_strided_slice %0 {offsets = [3, 0], sizes = [1, 256], strides = [1, 1]} : vector<8x256xf32> to vector<1x256xf32>
    %76 = vector.broadcast %75 : vector<1x256xf32> to vector<8x256xf32>
    %77 = arith.mulf %74, %76 : vector<8x256xf32>
    %c255_i32_17 = arith.constant 255 : i32
    %78 = tpu.dynamic_rotate %61 by %c255_i32_17 dim 1 : vector<8x256xf32>, i32 -> vector<8x256xf32>
    %79 = vector.extract_strided_slice %0 {offsets = [4, 0], sizes = [1, 256], strides = [1, 1]} : vector<8x256xf32> to vector<1x256xf32>
    %80 = vector.broadcast %79 : vector<1x256xf32> to vector<8x256xf32>
    %81 = arith.mulf %78, %80 : vector<8x256xf32>
    %c241_i32_18 = arith.constant 241 : i32
    %82 = tpu.dynamic_rotate %61 by %c241_i32_18 dim 1 : vector<8x256xf32>, i32 -> vector<8x256xf32>
    %83 = vector.extract_strided_slice %0 {offsets = [5, 0], sizes = [1, 256], strides = [1, 1]} : vector<8x256xf32> to vector<1x256xf32>
    %84 = vector.broadcast %83 : vector<1x256xf32> to vector<8x256xf32>
    %85 = arith.mulf %82, %84 : vector<8x256xf32>
    %c240_i32_19 = arith.constant 240 : i32
    %86 = tpu.dynamic_rotate %61 by %c240_i32_19 dim 1 : vector<8x256xf32>, i32 -> vector<8x256xf32>
    %87 = vector.extract_strided_slice %0 {offsets = [6, 0], sizes = [1, 256], strides = [1, 1]} : vector<8x256xf32> to vector<1x256xf32>
    %88 = vector.broadcast %87 : vector<1x256xf32> to vector<8x256xf32>
    %89 = arith.mulf %86, %88 : vector<8x256xf32>
    %c239_i32_20 = arith.constant 239 : i32
    %90 = tpu.dynamic_rotate %61 by %c239_i32_20 dim 1 : vector<8x256xf32>, i32 -> vector<8x256xf32>
    %91 = vector.extract_strided_slice %0 {offsets = [7, 0], sizes = [1, 256], strides = [1, 1]} : vector<8x256xf32> to vector<1x256xf32>
    %92 = vector.broadcast %91 : vector<1x256xf32> to vector<8x256xf32>
    %93 = arith.mulf %90, %92 : vector<8x256xf32>
    %94 = tpu.concatenate %65, %69, %73, %77, %61, %81, %85, %89, %93 in 0 : vector<8x256xf32>, vector<8x256xf32>, vector<8x256xf32>, vector<8x256xf32>, vector<8x256xf32>, vector<8x256xf32>, vector<8x256xf32>, vector<8x256xf32>, vector<8x256xf32> -> vector<72x256xf32>
    %95 = arith.truncf %94 : vector<72x256xf32> to vector<72x256xbf16>
    %c0_21 = arith.constant 0 : index
    %c0_22 = arith.constant 0 : index
    %96 = vector.load %arg4[%c0_21, %c0_22] : memref<4x72xbf16, #tpu.memory_space<vmem>>, vector<4x72xbf16>
    %cst_23 = arith.constant dense<0.000000e+00> : vector<4x256xf32>
    %97 = tpu.matmul %96, %95, %cst_23 {dimension_numbers = #tpu.dot_dimension_numbers<[1], [0], [0], [1], [0, 0, 1, 1], [], []>} : vector<4x72xbf16>, vector<72x256xbf16>, vector<4x256xf32> -> vector<4x256xf32>
    %c1 = arith.constant 1 : index
    %98 = memref.load %arg5[%c1] : memref<2xf32, #tpu.memory_space<smem>>
    %cst_24 = arith.constant dense<0.000000e+00> : vector<4xf32>
    %99 = vector.multi_reduction <add>, %97, %cst_24 [1] : vector<4x256xf32> to vector<4xf32>
    %100 = vector.shape_cast %99 : vector<4xf32> to vector<4x1xf32>
    %cst_25 = arith.constant 2.560000e+02 : f32
    %101 = vector.broadcast %cst_25 : f32 to vector<4x1xf32>
    %102 = arith.divf %100, %101 : vector<4x1xf32>
    %103 = vector.broadcast %102 : vector<4x1xf32> to vector<4x256xf32>
    %104 = arith.subf %97, %103 : vector<4x256xf32>
    %105 = arith.mulf %104, %104 : vector<4x256xf32>
    %cst_26 = arith.constant dense<0.000000e+00> : vector<4xf32>
    %106 = vector.multi_reduction <add>, %105, %cst_26 [1] : vector<4x256xf32> to vector<4xf32>
    %107 = vector.shape_cast %106 : vector<4xf32> to vector<4x1xf32>
    %cst_27 = arith.constant 2.560000e+02 : f32
    %108 = vector.broadcast %cst_27 : f32 to vector<4x1xf32>
    %109 = arith.divf %107, %108 : vector<4x1xf32>
    %cst_28 = arith.constant 9.99999974E-6 : f32
    %110 = vector.broadcast %cst_28 : f32 to vector<4x1xf32>
    %111 = arith.addf %109, %110 : vector<4x1xf32>
    %112 = math.rsqrt %111 : vector<4x1xf32>
    %113 = vector.broadcast %112 : vector<4x1xf32> to vector<4x256xf32>
    %114 = arith.mulf %104, %113 : vector<4x256xf32>
    %cst_29 = arith.constant 0.000000e+00 : f32
    %115 = vector.broadcast %cst_29 : f32 to vector<4x256xf32>
    %116 = arith.cmpf oge, %114, %115 : vector<4x256xf32>
    %117 = vector.broadcast %98 : f32 to vector<4x256xf32>
    %118 = arith.mulf %117, %114 : vector<4x256xf32>
    %119 = arith.select %116, %114, %118 : vector<4x256xi1>, vector<4x256xf32>
    %c0_30 = arith.constant 0 : index
    %c0_31 = arith.constant 0 : index
    %c0_32 = arith.constant 0 : index
    %120 = vector.load %arg6[%c0_30, %c0_31, %c0_32] : memref<1x4x256xf32, #tpu.memory_space<vmem>>, vector<1x4x256xf32>
    %121 = vector.shape_cast %120 : vector<1x4x256xf32> to vector<4x256xf32>
    %122 = vector.shape_cast %119 : vector<4x256xf32> to vector<1x4x256xf32>
    tpu.vector_store %arg6[%c0_30, %c0_31, %c0_32], %122 {strides = array<i32>} : memref<1x4x256xf32, #tpu.memory_space<vmem>>, vector<1x4x256xf32>,
    return
  }
  func.func @transform_0(%arg0: i32) -> (i32, i32, i32) {
    %c0_i32 = arith.constant 0 : i32
    %c0_i32_0 = arith.constant 0 : i32
    %c0_i32_1 = arith.constant 0 : i32
    return %arg0, %c0_i32, %c0_i32_0 : i32, i32, i32
  }
  func.func @transform_1(%arg0: i32) -> (i32, i32) {
    %c0_i32 = arith.constant 0 : i32
    %c0_i32_0 = arith.constant 0 : i32
    %c0_i32_1 = arith.constant 0 : i32
    return %c0_i32, %c0_i32_0 : i32, i32
  }
  func.func @transform_2(%arg0: i32) -> (i32, i32) {
    %c0_i32 = arith.constant 0 : i32
    %c0_i32_0 = arith.constant 0 : i32
    %c0_i32_1 = arith.constant 0 : i32
    return %c0_i32, %c0_i32_0 : i32, i32
  }
  func.func @transform_3(%arg0: i32) -> (i32, i32) {
    %c0_i32 = arith.constant 0 : i32
    %c0_i32_0 = arith.constant 0 : i32
    %c0_i32_1 = arith.constant 0 : i32
    return %c0_i32, %c0_i32_0 : i32, i32
  }
  func.func @transform_4(%arg0: i32) -> i32 {
    %c0_i32 = arith.constant 0 : i32
    %c0_i32_0 = arith.constant 0 : i32
    return %c0_i32 : i32
  }
  func.func @transform_5(%arg0: i32) -> (i32, i32, i32) {
    %c0_i32 = arith.constant 0 : i32
    %c0_i32_0 = arith.constant 0 : i32
    %c0_i32_1 = arith.constant 0 : i32
    return %arg0, %c0_i32, %c0_i32_0 : i32, i32, i32
  }
}

</mosaic_0001>

<bundles_post_ra>
// kernel: up_forward_pallas.1
= control target key start
LH: loop header
LB: loop body
LE: loop exit
PB: predicated region body
PF: predicated region fallthrough
CT: control target
= control target key end

     0   :  { %10 = vsyncpa [#allocation3], 0  ;;  %s855_s18 = smov 0   ;;  %s1089_s0 = inlined_call_operand.vmem [shape: bf16[2,8,256], index: 0, kind: input, shape index: {}]   ;;  %s1090_s1 = inlined_call_operand.vmem [shape: f32[8,256], index: 1, kind: input, shape index: {}]   ;;  %s1091_s2 = inlined_call_operand.vmem [shape: bf16[8,72], index: 2, kind: input, shape index: {}]   ;;  %s1092_s3 = inlined_call_operand.vmem [shape: bf16[4,72], index: 3, kind: input, shape index: {}]   ;;  %s1093_s4 = inlined_call_operand.vmem [shape: f32[2], index: 4, kind: input, shape index: {}]   ;;  %s1094_s5 = inlined_call_operand.vmem [shape: f32[2,4,256], index: 5, kind: output, shape index: {}]  }
   0x1 LB: > { %s696_s19 = sadd.s32 4294967295, %s813_s18   ;;  %p698_p0 = scmp.ge.s32.totalorder %s813_s18, 1  ;;  %s813_s18 = sphi %s855_s18, %s16_s18  }
   0x2   : > { %p157_p1 = scmp.lt.s32.totalorder %s813_s18, 3  ;;  %s179_s22 = sshll.u32 %s1093_s4, 4  ;;  %s180_s22 = int_to_ptr.vmem [resolvable:$true] %s179_s22 }
   0x3   : > { %p724_p3 = scmp.eq.s32.totalorder %s696_s19, 0  ;;  %s788_s24 = scalar_lea.vmem %s180_s22, 16 }
   0x4   : > { %p866_p2 = pnand %p698_p0, %p157_p1  ;;  %p789_p6 = scmp.ne.s32.totalorder %s180_s22, %s788_s24 }
   0x5   : > { %p796_p10 = scmp.lt.s32.totalorder %s180_s22, %s180_s22  ;;  %p797_p11 = scmp.lt.s32.totalorder %s788_s24, %s788_s24 }
   0x6   : > { %p720_p4 = pneg %p866_p2 }
   0x7   : > { %p798_p12 = por %p797_p11, %p796_p10 }
   0x8   : > { %p721_p5 = pnand %p724_p3, %p720_p4 }
   0xa   : > { %p790_p7 = pneg %p721_p5 }
   0xc   : > { %p791_p8 = pnand %p790_p7, %p789_p6 }
   0xe   : > { %p792_p9 = pneg %p791_p8 }
  0x10   : > { %p799_p13 = pnand %p798_p12, %p792_p9 }
  0x12   : > { %802 = shalt.err (!%p799_p13)
}
  0x13   : > { %s815_s25 = smov [#allocation2]   ;;  %200 = sbr.rel (%p866_p2) target bundleno = 1344 (0x540), region = 40 }
  0x14   : > { %723 = dma.vmem_to_smem (!%p721_p5), %s180_s22, 16, %s815_s25, [#allocation3]  }
  0x18   : > { %808 = dma.done.wait (%p724_p3), [#allocation3], 16  }
  0x19   : > { %810 = vsyncadd (%p724_p3), [#allocation3], 4294967280 }
  0x1a   : > { %206 = sfence }
  0x1b   : > { %p229_p0 = scmp.lt.s32.totalorder %s696_s19, 1  ;;  %s816_s30 = smov 111   ;;  %v824_v4 = vmov 0   ;;  %v249_v5 = vlaneseq  ;;  %v241_v9 = vld [vmem:[%s1090_s1 + $0x8] sm:$0xff]  ;;  %v240_v10 = vld [vmem:[%s1090_s1] sm:$0xff]  ;;  %vm398_vm4 = vcmask 1043456  }
  0x1c   : > { %s817_s6 = smov 112   ;;  %s818_s7 = smov 113   ;;  %437 = vmatprep.mubr.bf16.mxu0 %v824_v4  ;;  %587 = vmatprep.mubr.bf16.mxu1 %v824_v4  ;;  %vm394_vm9 = vcmask 588800  }
  0x1d   : > { %s1097_s19 = smov (!%p229_p0, %s696_s19), 1  ;;  %s819_s8 = smov 127   ;;  %v255_v6 = vshrl.u32 %v249_v5, 7  ;;  %v901_v7 = vand.u32 127, %v249_v5 }
  0x1e   : > { %s714_s26 = sshll.u32 %s1097_s19, 3  ;;  %s820_s9 = smov 1  }
  0x1f   : > { %s233_s29 = scalar_lea.vmem %s1089_s0, %s714_s26  ;;  %s821_s10 = smov 15   ;;  %v375_v8 = vsub.s32 7, %v255_v6  ;;  %v341_v11 = vsub.s32 5, %v255_v6  ;;  %v358_v12 = vsub.s32 6, %v255_v6  ;;  %vm353_vm0 = vcmp.lt.s32.totalorder %v901_v7, 112 }
  0x20   : > { %v885_v0 = vld [vmem:[%s233_s29] sm:$0xff]  ;;  %s822_s11 = smov 16   ;;  %s823_s12 = smov 17   ;;  %v324_v13 = vsub.s32 4, %v255_v6  ;;  %v290_v14 = vsub.s32 2, %v255_v6  ;;  %v307_v15 = vsub.s32 3, %v255_v6 }
  0x21   : > { %v243_v1 = vunpack.c.l.bf16 %v885_v0  ;;  %v244_v2 = vunpack.c.h.bf16 %v885_v0  ;;  %vm336_vm1 = vcmp.lt.s32.totalorder %v901_v7, 113  ;;  %vm319_vm2 = vcmp.lt.s32.totalorder %v901_v7, 127  ;;  %s446_s21 = sld [smem:[#allocation2]]  ;;  %s238_s28 = scalar_lea.vmem %s1094_s5, %s714_s26 }
  0x22   : > { %vm370_vm3 = vcmp.lt.s32.totalorder %v901_v7, 111  ;;  %v913_v16 = vrot.slane %v241_v9, %v375_v8  ;;  %v915_v17 = vrot.slane %v240_v10, %v375_v8  ;;  %v256_v18 = vsub.s32 0, %v255_v6  ;;  %s711_s24 = sld [smem:[#allocation2 + $0x1]] }
  0x23   : > { %v744_v3 = vpack.i.bf16 %v244_v2, %v243_v1  ;;  %v273_v19 = vsub.s32 1, %v255_v6  ;;  %v917_v20 = vrot.slane %v241_v9, %v341_v11  ;;  %v919_v21 = vrot.slane %v241_v9, %v358_v12 }
  0x24   : > { %v921_v22 = vrot.slane %v240_v10, %v341_v11  ;;  %v923_v23 = vrot.slane %v240_v10, %v358_v12  ;;  %vm302_vm5 = vcmp.lt.s32.totalorder %v901_v7, 1  ;;  %vm285_vm6 = vcmp.lt.s32.totalorder %v901_v7, 15 }
  0x25   : > { %745 = vrot.lane.b32.xlu0 %v744_v3, %s816_s30  ;;  %755 = vrot.lane.b32.xlu1 %v744_v3, %s817_s6  ;;  %v927_v26 = vrot.slane %v241_v9, %v324_v13  ;;  %v929_v27 = vrot.slane %v240_v10, %v324_v13  ;;  %v931_v28 = vrot.slane %v241_v9, %v290_v14  ;;  %vm268_vm7 = vcmp.lt.s32.totalorder %v901_v7, 16 }
  0x26   : > { %v933_v29 = vrot.slane %v241_v9, %v307_v15  ;;  %v935_v34 = vrot.slane %v240_v10, %v290_v14  ;;  %v937_v35 = vrot.slane %v240_v10, %v307_v15  ;;  %v939_v36 = vrot.slane %v241_v9, %v256_v18 }
  0x27   : > { %v941_v37 = vrot.slane %v241_v9, %v273_v19  ;;  %vm251_vm8 = vcmp.lt.s32.totalorder %v901_v7, 17  ;;  %v955_v46 = vrot.slane %v240_v10, %v256_v18  ;;  %v957_v47 = vrot.slane %v240_v10, %v273_v19 }
  0x29   : > { %750 = vrot.lane.b32.xlu0 %v744_v3, %s818_s7  ;;  %760 = vrot.lane.b32.xlu1 %v744_v3, %s819_s8 }
  0x2d   : > { %770 = vrot.lane.b32.xlu1 %v744_v3, %s820_s9  ;;  %765 = vrot.lane.b32.xlu0 %v744_v3, %s821_s10 }
  0x31   : > { %780 = vrot.lane.b32.xlu1 %v744_v3, %s822_s11  ;;  %775 = vrot.lane.b32.xlu0 %v744_v3, %s823_s12 }
  0x97   : > { %v746_v24 = vpop.permute.xlu0 %745  ;;  %v756_v25 = vpop.permute.xlu1 %755 }
  0x98   : > { %v748_v30 = vunpack.i.h.bf16 %v746_v24  ;;  %v747_v31 = vunpack.i.l.bf16 %v746_v24  ;;  %v758_v32 = vunpack.i.h.bf16 %v756_v25  ;;  %v757_v33 = vunpack.i.l.bf16 %v756_v25 }
  0x9a   : > { %v354_v38 = vsel %vm353_vm0, %v757_v33, %v758_v32  ;;  %v355_v39 = vsel %vm353_vm0, %v758_v32, %v757_v33  ;;  %v372_v40 = vsel %vm370_vm3, %v748_v30, %v747_v31  ;;  %v371_v41 = vsel %vm370_vm3, %v747_v31, %v748_v30 }
  0x9b   : > { %v751_v42 = vpop.permute.xlu0 %750  ;;  %v761_v43 = vpop.permute.xlu1 %760  ;;  %v382_v44 = vmul.f32 %v913_v16, %v372_v40  ;;  %v381_v45 = vmul.f32 %v915_v17, %v371_v41  ;;  %v365_v54 = vmul.f32 %v919_v21, %v355_v39  ;;  %v364_v55 = vmul.f32 %v923_v23, %v354_v38 }
  0x9c   : > { %v753_v48 = vunpack.i.h.bf16 %v751_v42  ;;  %v752_v49 = vunpack.i.l.bf16 %v751_v42  ;;  %v763_v50 = vunpack.i.h.bf16 %v761_v43  ;;  %v762_v51 = vunpack.i.l.bf16 %v761_v43 }
  0x9d   : > { %v392_v52 = vpack.c.bf16 %v382_v44, %v382_v44  ;;  %v391_v53 = vpack.c.bf16 %v381_v45, %v381_v45 }
  0x9e   : > { %v337_v56 = vsel %vm336_vm1, %v752_v49, %v753_v48  ;;  %v338_v57 = vsel %vm336_vm1, %v753_v48, %v752_v49  ;;  %v320_v58 = vsel %vm319_vm2, %v762_v51, %v763_v50  ;;  %v321_v59 = vsel %vm319_vm2, %v763_v50, %v762_v51 }
  0x9f   : > { %707 = vmatprep.subr.msk.bf16.mxu0 %vm398_vm4, %v392_v52  ;;  %v400_v60 = vsel %vm398_vm4, %v391_v53, 0  ;;  %v771_v61 = vpop.permute.xlu1 %770  ;;  %v766_v62 = vpop.permute.xlu0 %765  ;;  %v348_v63 = vmul.f32 %v917_v20, %v338_v57  ;;  %v347_v3 = vmul.f32 %v921_v22, %v337_v56  ;;  %v331_v4 = vmul.f32 %v927_v26, %v321_v59 }
  0xa0   : > { %412 = vmatpush1.bf16.msra.mxu0 %v400_v60  ;;  %v773_v5 = vunpack.i.h.bf16 %v771_v61  ;;  %v772_v6 = vunpack.i.l.bf16 %v771_v61  ;;  %v768_v8 = vunpack.i.h.bf16 %v766_v62  ;;  %v767_v9 = vunpack.i.l.bf16 %v766_v62 }
  0xa1   : > { %v390_v10 = vpack.c.bf16 %v365_v54, %v348_v63  ;;  %v389_v11 = vpack.c.bf16 %v364_v55, %v347_v3  ;;  %v388_v12 = vpack.c.bf16 %v331_v4, %v244_v2  ;;  %v330_v13 = vmul.f32 %v929_v27, %v320_v58  ;;  %v393_v54 = vld [vmem:[%s1091_s2] sm:$0xf] }
  0xa2   : > { %v303_v14 = vsel %vm302_vm5, %v772_v6, %v773_v5  ;;  %v304_v15 = vsel %vm302_vm5, %v773_v5, %v772_v6  ;;  %v286_v18 = vsel %vm285_vm6, %v767_v9, %v768_v8  ;;  %v287_v19 = vsel %vm285_vm6, %v768_v8, %v767_v9 }
  0xa3   : > { %413 = vmatprep.subr.bf16.mxu0 %v390_v10  ;;  %v781_v24 = vpop.permute.xlu1 %780  ;;  %v776_v25 = vpop.permute.xlu0 %775  ;;  %v387_v2 = vpack.c.bf16 %v330_v13, %v243_v1  ;;  %v297_v30 = vmul.f32 %v931_v28, %v286_v18  ;;  %v314_v31 = vmul.f32 %v933_v29, %v303_v14  ;;  %v296_v32 = vmul.f32 %v935_v34, %v287_v19 }
  0xa4   : > { %414 = vmatpush1.bf16.msra.mxu0 %v389_v11  ;;  %v783_v33 = vunpack.i.h.bf16 %v781_v24  ;;  %v782_v38 = vunpack.i.l.bf16 %v781_v24  ;;  %v778_v39 = vunpack.i.h.bf16 %v776_v25  ;;  %v777_v40 = vunpack.i.l.bf16 %v776_v25 }
  0xa5   : > { %415 = vmatprep.subr.bf16.mxu0 %v388_v12  ;;  %v386_v41 = vpack.c.bf16 %v314_v31, %v297_v30  ;;  %v313_v42 = vmul.f32 %v937_v35, %v304_v15  ;;  %v466_v11 = vstv %s446_s21 }
  0xa6   : > { %v269_v43 = vsel %vm268_vm7, %v782_v38, %v783_v33  ;;  %v270_v0 = vsel %vm268_vm7, %v783_v33, %v782_v38  ;;  %v252_v1 = vsel %vm251_vm8, %v777_v40, %v778_v39  ;;  %v253_v44 = vsel %vm251_vm8, %v778_v39, %v777_v40 }
  0xa7   : > { %v263_v45 = vmul.f32 %v939_v36, %v252_v1  ;;  %v280_v48 = vmul.f32 %v941_v37, %v269_v43  ;;  %v385_v49 = vpack.c.bf16 %v313_v42, %v296_v32  ;;  %v262_v50 = vmul.f32 %v955_v46, %v253_v44 }
  0xa8   : > { %416 = vmatpush1.bf16.msra.mxu0 %v387_v2  ;;  %v279_v51 = vmul.f32 %v957_v47, %v270_v0 }
  0xa9   : > { %417 = vmatprep.subr.bf16.mxu0 %v386_v41  ;;  %v384_v52 = vpack.c.bf16 %v280_v48, %v263_v45 }
  0xaa   : > { %v383_v53 = vpack.c.bf16 %v279_v51, %v262_v50 }
  0xac   : > { %418 = vmatpush1.bf16.msra.mxu0 %v385_v49 }
  0xad   : > { %419 = vmatprep.subr.bf16.mxu0 %v384_v52 }
  0xb0   : > { %420 = vmatpush1.bf16.msra.mxu0 %v383_v53 }
  0xb3   : > { %708 = vmatmul.mubr.msk.bf16.vlgmr.msra.gmra.mxu0 %vm394_vm9, %v393_v54 }
 0x173   : > { %v439_v55 = vpop.f32.mrf.mxu0 }
 0x175   : > { %v441_v56 = vpop.f32.mrf.mxu0 }
 0x176   : > { %v447_v57 = vadd.f32 %v441_v56, %v439_v55 }
 0x177   : > { %v443_v58 = vpop.f32.mrf.mxu0 }
 0x178   : > { %448 = vadd.xlane.f32.xlu0 %v447_v57 }
 0x179   : > { %v444_v59 = vpop.f32.mrf.mxu0 }
 0x201   : > { %v449_v60 = vpop.xlane.xlu0 %448 }
 0x202   : > { %v451_v61 = vmul.f32 0.00390625, %v449_v60 }
 0x204   : > { %v452_v62 = vsub.f32 %v439_v55, %v451_v61  ;;  %v453_v63 = vsub.f32 %v441_v56, %v451_v61 }
 0x206   : > { %v454_v3 = vmul.f32 %v452_v62, %v452_v62  ;;  %v455_v4 = vmul.f32 %v453_v63, %v453_v63 }
 0x208   : > { %v456_v5 = vadd.f32 %v455_v4, %v454_v3 }
 0x20a   : > { %457 = vadd.xlane.f32.xlu1 %v456_v5 }
 0x293   : > { %v458_v6 = vpop.xlane.xlu1 %457 }
 0x294   : > { %v459_v8 = vmul.f32 0.00390625, %v458_v6 }
 0x296   : > { %v460_v9 = vadd.f32 1e-05, %v459_v8 }
 0x298   : > { %784 = vrsqrt.f32 %v460_v9 }
 0x2a5   : > { %v785_v10 = vpop.eup %784 }
 0x2a6   : > { %v462_v12 = vmul.f32 %v785_v10, %v452_v62  ;;  %v463_v13 = vmul.f32 %v785_v10, %v453_v63 }
 0x2a8   : > { %vm464_vm10 = vcmp.ge.f32.partialorder %v462_v12, 0.0  ;;  %vm465_vm11 = vcmp.ge.f32.partialorder %v463_v13, 0.0  ;;  %v467_v14 = vmul.f32 %v466_v11, %v462_v12  ;;  %v468_v15 = vmul.f32 %v466_v11, %v463_v13 }
 0x2aa   : > { %v470_v18 = vsel %vm465_vm11, %v463_v13, %v468_v15  ;;  %v469_v19 = vsel %vm464_vm10, %v462_v12, %v467_v14 }
 0x2ab   : > { %529 = vrot.lane.b32.xlu1 %v470_v18, %s816_s30  ;;  %527 = vrot.lane.b32.xlu0 %v469_v19, %s816_s30 }
 0x2af   : > { %513 = vrot.lane.b32.xlu1 %v470_v18, %s818_s7  ;;  %511 = vrot.lane.b32.xlu0 %v469_v19, %s818_s7 }
 0x2b3   : > { %521 = vrot.lane.b32.xlu1 %v470_v18, %s817_s6  ;;  %519 = vrot.lane.b32.xlu0 %v469_v19, %s817_s6 }
 0x2b7   : > { %505 = vrot.lane.b32.xlu1 %v470_v18, %s819_s8  ;;  %503 = vrot.lane.b32.xlu0 %v469_v19, %s819_s8 }
 0x2bb   : > { %489 = vrot.lane.b32.xlu1 %v470_v18, %s821_s10  ;;  %487 = vrot.lane.b32.xlu0 %v469_v19, %s821_s10 }
 0x2bf   : > { %497 = vrot.lane.b32.xlu1 %v470_v18, %s820_s9  ;;  %495 = vrot.lane.b32.xlu0 %v469_v19, %s820_s9 }
 0x2c3   : > { %473 = vrot.lane.b32.xlu1 %v470_v18, %s823_s12  ;;  %471 = vrot.lane.b32.xlu0 %v469_v19, %s823_s12 }
 0x2c7   : > { %481 = vrot.lane.b32.xlu1 %v470_v18, %s822_s11  ;;  %479 = vrot.lane.b32.xlu0 %v469_v19, %s822_s11 }
 0x31d   : > { %v530_v24 = vpop.permute.xlu1 %529  ;;  %v528_v25 = vpop.permute.xlu0 %527 }
 0x31e   : > { %v531_v2 = vsel %vm370_vm3, %v528_v25, %v530_v24  ;;  %v532_v30 = vsel %vm370_vm3, %v530_v24, %v528_v25  ;;  %v545_v24 = vld [vmem:[%s1092_s3] sm:$0x3] }
 0x31f   : > { %v533_v31 = vmul.f32 %v531_v2, %v915_v17  ;;  %v534_v32 = vmul.f32 %v532_v30, %v913_v16 }
 0x321   : > { %v514_v33 = vpop.permute.xlu1 %513  ;;  %v512_v38 = vpop.permute.xlu0 %511  ;;  %v544_v39 = vpack.c.bf16 %v534_v32, %v534_v32  ;;  %v543_v40 = vpack.c.bf16 %v533_v31, %v533_v31 }
 0x322   : > { %v515_v42 = vsel %vm336_vm1, %v512_v38, %v514_v33  ;;  %v516_v43 = vsel %vm336_vm1, %v514_v33, %v512_v38 }
 0x323   : > { %709 = vmatprep.subr.msk.bf16.mxu1 %vm398_vm4, %v544_v39  ;;  %v550_v41 = vsel %vm398_vm4, %v543_v40, 0  ;;  %v517_v44 = vmul.f32 %v515_v42, %v921_v22  ;;  %v518_v45 = vmul.f32 %v516_v43, %v917_v20 }
 0x324   : > { %562 = vmatpush1.bf16.msra.mxu1 %v550_v41 }
 0x325   : > { %v522_v0 = vpop.permute.xlu1 %521  ;;  %v520_v1 = vpop.permute.xlu0 %519 }
 0x326   : > { %v523_v16 = vsel %vm353_vm0, %v520_v1, %v522_v0  ;;  %v524_v17 = vsel %vm353_vm0, %v522_v0, %v520_v1 }
 0x327   : > { %v525_v48 = vmul.f32 %v523_v16, %v923_v23  ;;  %v526_v49 = vmul.f32 %v524_v17, %v919_v21  ;;  %v619_v17 = vstv %s711_s24 }
 0x329   : > { %v506_v50 = vpop.permute.xlu1 %505  ;;  %v504_v51 = vpop.permute.xlu0 %503  ;;  %v542_v52 = vpack.c.bf16 %v526_v49, %v518_v45  ;;  %v541_v53 = vpack.c.bf16 %v525_v48, %v517_v44 }
 0x32a   : > { %v507_v54 = vsel %vm319_vm2, %v504_v51, %v506_v50  ;;  %v508_v55 = vsel %vm319_vm2, %v506_v50, %v504_v51 }
 0x32b   : > { %v509_v56 = vmul.f32 %v507_v54, %v929_v27  ;;  %v510_v22 = vmul.f32 %v508_v55, %v927_v26  ;;  %563 = vmatprep.subr.bf16.mxu1 %v542_v52 }
 0x32c   : > { %564 = vmatpush1.bf16.msra.mxu1 %v541_v53 }
 0x32d   : > { %v490_v20 = vpop.permute.xlu1 %489  ;;  %v488_v23 = vpop.permute.xlu0 %487  ;;  %v540_v57 = vpack.c.bf16 %v510_v22, %v470_v18  ;;  %v539_v21 = vpack.c.bf16 %v509_v56, %v469_v19 }
 0x32e   : > { %v491_v58 = vsel %vm285_vm6, %v488_v23, %v490_v20  ;;  %v492_v59 = vsel %vm285_vm6, %v490_v20, %v488_v23 }
 0x32f   : > { %565 = vmatprep.subr.bf16.mxu1 %v540_v57  ;;  %v493_v62 = vmul.f32 %v492_v59, %v935_v34  ;;  %v494_v63 = vmul.f32 %v491_v58, %v931_v28 }
 0x330   : > { %566 = vmatpush1.bf16.msra.mxu1 %v539_v21 }
 0x331   : > { %v498_v60 = vpop.permute.xlu1 %497  ;;  %v496_v61 = vpop.permute.xlu0 %495 }
 0x332   : > { %v499_v27 = vsel %vm302_vm5, %v496_v61, %v498_v60  ;;  %v500_v26 = vsel %vm302_vm5, %v498_v60, %v496_v61 }
 0x333   : > { %v501_v3 = vmul.f32 %v500_v26, %v937_v35  ;;  %v502_v4 = vmul.f32 %v499_v27, %v933_v29 }
 0x335   : > { %v474_v5 = vpop.permute.xlu1 %473  ;;  %v472_v6 = vpop.permute.xlu0 %471  ;;  %v538_v8 = vpack.c.bf16 %v502_v4, %v494_v63  ;;  %v537_v9 = vpack.c.bf16 %v501_v3, %v493_v62 }
 0x336   : > { %v475_v10 = vsel %vm251_vm8, %v472_v6, %v474_v5  ;;  %v476_v11 = vsel %vm251_vm8, %v474_v5, %v472_v6 }
 0x337   : > { %567 = vmatprep.subr.bf16.mxu1 %v538_v8  ;;  %v477_v35 = vmul.f32 %v476_v11, %v955_v46  ;;  %v478_v13 = vmul.f32 %v475_v10, %v939_v36 }
 0x338   : > { %568 = vmatpush1.bf16.msra.mxu1 %v537_v9 }
 0x339   : > { %v482_v12 = vpop.permute.xlu1 %481  ;;  %v480_v34 = vpop.permute.xlu0 %479 }
 0x33a   : > { %v483_v28 = vsel %vm268_vm7, %v480_v34, %v482_v12  ;;  %v484_v29 = vsel %vm268_vm7, %v482_v12, %v480_v34 }
 0x33b   : > { %v485_v14 = vmul.f32 %v484_v29, %v957_v47  ;;  %v486_v15 = vmul.f32 %v483_v28, %v941_v37 }
 0x33d   : > { %v536_v18 = vpack.c.bf16 %v486_v15, %v478_v13  ;;  %v535_v19 = vpack.c.bf16 %v485_v14, %v477_v35 }
 0x33f   : > { %569 = vmatprep.subr.bf16.mxu1 %v536_v18 }
 0x340   : > { %570 = vmatpush1.bf16.msra.mxu1 %v535_v19 }
 0x343   : > { %710 = vmatmul.mubr.msk.bf16.vlgmr.msra.gmra.mxu1 %vm394_vm9, %v545_v24 }
 0x403   : > { %v589_v7 = vpop.f32.mrf.mxu1 }
 0x404   : > { %v597_v46 = vsel %vm398_vm4, %v589_v7, 0.0 }
 0x405   : > { %v591_v25 = vpop.f32.mrf.mxu1 }
 0x406   : > { %v598_v36 = vsel %vm398_vm4, %v591_v25, 0.0 }
 0x407   : > { %v593_v2 = vpop.f32.mrf.mxu1  ;;  %v599_v47 = vadd.f32 %v598_v36, %v597_v46 }
 0x409   : > { %600 = vadd.xlane.f32.xlu0 %v599_v47  ;;  %v594_v37 = vpop.f32.mrf.mxu1 }
 0x492   : > { %v601_v30 = vpop.xlane.xlu0 %600 }
 0x493   : > { %v602_v31 = vmul.f32 0.00390625, %v601_v30 }
 0x495   : > { %v603_v32 = vsub.f32 %v589_v7, %v602_v31  ;;  %v604_v33 = vsub.f32 %v591_v25, %v602_v31 }
 0x497   : > { %v605_v38 = vmul.f32 %v603_v32, %v603_v32  ;;  %v606_v39 = vmul.f32 %v604_v33, %v604_v33 }
 0x499   : > { %v607_v40 = vsel %vm398_vm4, %v605_v38, 0.0  ;;  %v608_v41 = vsel %vm398_vm4, %v606_v39, 0.0 }
 0x49a   : > { %v609_v42 = vadd.f32 %v608_v41, %v607_v40 }
 0x49c   : > { %610 = vadd.xlane.f32.xlu1 %v609_v42 }
 0x525   : > { %v611_v43 = vpop.xlane.xlu1 %610 }
 0x526   : > { %v612_v0 = vmul.f32 0.00390625, %v611_v43 }
 0x528   : > { %v613_v1 = vadd.f32 1e-05, %v612_v0 }
 0x52a   : > { %786 = vrsqrt.f32 %v613_v1 }
 0x537   : > { %v787_v16 = vpop.eup %786 }
 0x538   : > { %v615_v44 = vmul.f32 %v787_v16, %v603_v32  ;;  %v616_v45 = vmul.f32 %v787_v16, %v604_v33 }
 0x53a   : > { %vm617_vm12 = vcmp.ge.f32.partialorder %v615_v44, 0.0  ;;  %vm618_vm13 = vcmp.ge.f32.partialorder %v616_v45, 0.0  ;;  %v620_v48 = vmul.f32 %v619_v17, %v615_v44  ;;  %v621_v49 = vmul.f32 %v619_v17, %v616_v45 }
 0x53c   : > { %v622_v50 = vsel %vm617_vm12, %v615_v44, %v620_v48  ;;  %v623_v51 = vsel %vm618_vm13, %v616_v45, %v621_v49 }
 0x53d   : > { %v626_v52 = vcombine.low %v622_v50, %v623_v51 }
 0x53f   : > { %628 = vst [vmem:[%s238_s28] sm:$0xff] %v626_v52 }
 0x540 PF: > { %s16_s18 = sadd.s32 1, %s813_s18  }
 0x541   : > { %p13_p1 = scmp.ge.s32.totalorder %s16_s18, 4  }
 0x543   :  { %15 = sbr.rel (!%p13_p1) target bundleno = 1 (0x1), region = 75 }
 0x548   :  { %650 = vsyncpa [#allocation3], 1 }
 0x549   :  { %652 = vsyncpa [#allocation3 + $0x1], 1 }

</bundles_post_ra>
